<compile_context>
chip_gen: v7x
topology: tpu7x:2x2x1
jax: 0.10.0
libtpu: 0.0.40
codegen_flags: <defaults>
</compile_context>

<pallas_src>
import jax
import jax.numpy as jnp
from jax.experimental import pallas as pl
from jax.experimental.pallas import tpu as pltpu


_LANES = 128
_STATS_TILE_CAP = 2048   # rows/tile for kernel 1 (2 read-only inputs ~4 MiB in flight)
_NORM_TILE_CAP = 1024    # rows/tile for kernel 2 (2 in + 2 out ~4 MiB in flight)


def _pick_row_tile(n_rows, cap, min_blocks=2):
    """n_rows % 8 == 0 (wrapper guarantees it).  Largest multiple-of-8 tile
    <= cap that divides n_rows exactly, preferring >= min_blocks blocks so both
    v7x TensorCores get work on the 'parallel' grid axes."""
    target = min(cap, max(8, (n_rows // min_blocks) // 8 * 8))
    if n_rows <= target:
        return n_rows
    for d in range(target, 7, -8):
        if n_rows % d == 0:
            return d
    return n_rows  # unreachable when n_rows % 8 == 0


# ---------------------------------------------------------------------------
# Kernel 1: fused stats (min/max/sse) + KL reduction, mega-core split
# ---------------------------------------------------------------------------

def _stats_and_kl(r2, x2, mu, logvar, n_valid):
    """Returns f32[2, 6, 8, 128]: per mega-core partition, elementwise (8,128)
    partials of [min_r, max_r, min_x, max_x, sse, kl].  The cheap cross-lane
    reduction / cross-partition combine happens in plain JAX."""
    rows, lanes = r2.shape                 # rows % 8 == 0, lanes == 128
    tile = _pick_row_tile(rows, _STATS_TILE_CAP)
    grid_n = pl.cdiv(rows, tile)
    n_per = pl.cdiv(grid_n, 2)             # row-blocks per mega-core partition
    has_phantom = (2 * n_per != grid_n)
    needs_mask = has_phantom or (rows % tile != 0) or (n_valid != rows * lanes)
    b, z = mu.shape

    if has_phantom:
        # Partition 1's trailing block falls off the end of the array; clamp
        # the DMA to the last real block and fully mask it in-kernel.
        def rx_map(p, i):
            return (jnp.minimum(p * n_per + i, grid_n - 1), 0)
    else:
        def rx_map(p, i):
            return (p * n_per + i, 0)

    def kernel(r_ref, x_ref, mu_ref, lv_ref, out_ref):
        p = pl.program_id(0)
        i = pl.program_id(1)
        g = p * n_per + i                  # global row-block id (may be phantom)

        @pl.when(i == 0)                   # fresh accumulators for this partition
        def _():
            out_ref[0, 0] = jnp.full((8, lanes), jnp.inf, jnp.float32)   # min recon
            out_ref[0, 1] = jnp.full((8, lanes), -jnp.inf, jnp.float32)  # max recon
            out_ref[0, 2] = jnp.full((8, lanes), jnp.inf, jnp.float32)   # min x
            out_ref[0, 3] = jnp.full((8, lanes), -jnp.inf, jnp.float32)  # max x
            out_ref[0, 4] = jnp.zeros((8, lanes), jnp.float32)           # sse
            out_ref[0, 5] = jnp.zeros((8, lanes), jnp.float32)           # kl

        r = r_ref[...].astype(jnp.float32)
        x = x_ref[...].astype(jnp.float32)
        rc = jnp.where(jnp.isnan(r), 0.0, r)   # NaN -> 0 only for the min/max stats
        xc = jnp.where(jnp.isnan(x), 0.0, x)
        d = r - x                               # raw diff: matches F.mse_loss
        sq = d * d

        def fold(r_lo, r_hi, x_lo, x_hi, s):
            # Pure-VPU elementwise fold into the resident (8,128) accumulators;
            # no per-step cross-lane (XLU) reductions, no per-step SMEM stores.
            r_lo = r_lo.reshape(-1, 8, lanes)
            r_hi = r_hi.reshape(-1, 8, lanes)
            x_lo = x_lo.reshape(-1, 8, lanes)
            x_hi = x_hi.reshape(-1, 8, lanes)
            s = s.reshape(-1, 8, lanes)
            out_ref[0, 0] = jnp.minimum(out_ref[0, 0], jnp.min(r_lo, axis=0))
            out_ref[0, 1] = jnp.maximum(out_ref[0, 1], jnp.max(r_hi, axis=0))
            out_ref[0, 2] = jnp.minimum(out_ref[0, 2], jnp.min(x_lo, axis=0))
            out_ref[0, 3] = jnp.maximum(out_ref[0, 3], jnp.max(x_hi, axis=0))
            out_ref[0, 4] = out_ref[0, 4] + jnp.sum(s, axis=0)

        if needs_mask:
            @pl.when(g < grid_n - 1)               # interior blocks: no mask
            def _():
                fold(rc, rc, xc, xc, sq)

            @pl.when(g >= grid_n - 1)              # tail / phantom block only
            def _():
                ridx = jax.lax.broadcasted_iota(jnp.int32, (tile, lanes), 0)
                lidx = jax.lax.broadcasted_iota(jnp.int32, (tile, lanes), 1)
                flat = g * (tile * lanes) + ridx * lanes + lidx
                valid = flat < n_valid
                fold(jnp.where(valid, rc, jnp.inf),
                     jnp.where(valid, rc, -jnp.inf),
                     jnp.where(valid, xc, jnp.inf),
                     jnp.where(valid, xc, -jnp.inf),
                     jnp.where(valid, sq, 0.0))
        else:
            fold(rc, rc, xc, xc, sq)

        # KL term is tiny ((B, Z)); fold it in once on partition 0's last step.
        @pl.when((i == n_per - 1) & (p == 0))
        def _():
            mu_v = mu_ref[...].astype(jnp.float32)
            lv_v = lv_ref[...].astype(jnp.float32)
            kl = jnp.sum(1.0 + lv_v - mu_v * mu_v - jnp.exp(lv_v))
            out_ref[0, 5] = jnp.full((8, lanes), kl, jnp.float32)

    return pl.pallas_call(
        kernel,
        out_shape=jax.ShapeDtypeStruct((2, 6, 8, lanes), jnp.float32),
        grid=(2, n_per),
        in_specs=[
            pl.BlockSpec((tile, lanes), rx_map),
            pl.BlockSpec((tile, lanes), rx_map),
            pl.BlockSpec((b, z), lambda p, i: (0, 0)),
            pl.BlockSpec((b, z), lambda p, i: (0, 0)),
        ],
        out_specs=pl.BlockSpec((1, 6, 8, lanes), lambda p, i: (p, 0, 0, 0)),
        compiler_params=pltpu.CompilerParams(
            dimension_semantics=("parallel", "arbitrary")),
    )(r2, x2, mu, logvar)


# ---------------------------------------------------------------------------
# Kernel 2: fused normalize of both tensors (no repeat materialized)
# ---------------------------------------------------------------------------

def _normalize(sb, r2, x2):
    """sb = f32[4] = [scale_r, bias_r, scale_x, bias_x]; r2/x2 = (rows, 128).
    One HBM pass: NaN->0 then hoisted FMA normalization for both tensors."""
    rows, lanes = r2.shape
    tile = _pick_row_tile(rows, _NORM_TILE_CAP)
    grid_n = pl.cdiv(rows, tile)
    out_dtype = r2.dtype
    # TODO(synk): emit bf16 here instead if the caller's LPIPS runs in bf16.

    def kernel(sb_ref, r_ref, x_ref, ro_ref, xo_ref):
        r = r_ref[...].astype(jnp.float32)
        x = x_ref[...].astype(jnp.float32)
        r = jnp.where(jnp.isnan(r), 0.0, r)
        x = jnp.where(jnp.isnan(x), 0.0, x)
        # Hoisted FMA form of 2*(t - mn)/(mx - mn + 1e-8) - 1
        ro_ref[...] = (r * sb_ref[0] + sb_ref[1]).astype(out_dtype)
        xo_ref[...] = (x * sb_ref[2] + sb_ref[3]).astype(out_dtype)

    out_sd = jax.ShapeDtypeStruct((rows, lanes), out_dtype)
    return pl.pallas_call(
        kernel,
        out_shape=(out_sd, out_sd),
        grid=(grid_n,),
        in_specs=[
            pl.BlockSpec((4,), lambda i: (0,),
                         memory_space=pltpu.MemorySpace.SMEM),
            pl.BlockSpec((tile, lanes), lambda i: (i, 0)),
            pl.BlockSpec((tile, lanes), lambda i: (i, 0)),
        ],
        out_specs=(
            pl.BlockSpec((tile, lanes), lambda i: (i, 0)),
            pl.BlockSpec((tile, lanes), lambda i: (i, 0)),
        ),
        compiler_params=pltpu.CompilerParams(
            dimension_semantics=("parallel",)),
    )(sb, r2, x2)


# ---------------------------------------------------------------------------
# Module-equivalent wrapper
# ---------------------------------------------------------------------------

class LAIVAELoss:
    """JAX/Pallas equivalent of the PyTorch LAIVAELoss module."""

    def __init__(self, data_length, batch_size):
        self._loss_weight = data_length / batch_size

    def get_loss_weight(self):
        return self._loss_weight

    def __call__(self, reconstructed_x, x, mu, logvar, lpips):
        B, C, H, W = x.shape
        total = B * C * H * W
        # TODO(synk): the host-side "input contains NaN" warning prints from the
        # PyTorch forward are omitted (would force a device->host sync).

        # Lane-dense layout: flatten to (rows, 128) with rows % 8 == 0 (rare
        # zero-pad when total % 1024 != 0; padded elements are masked in the
        # stats kernel and sliced off after normalization).
        r_flat = reconstructed_x.reshape(total)
        x_flat = x.reshape(total)
        pad = (-total) % (8 * _LANES)
        if pad:
            r_flat = jnp.pad(r_flat, (0, pad))
            x_flat = jnp.pad(x_flat, (0, pad))
        rows = (total + pad) // _LANES
        r2 = r_flat.reshape(rows, _LANES)
        x2 = x_flat.reshape(rows, _LANES)

        stats = _stats_and_kl(r2, x2, mu, logvar, n_valid=total)
        min_r = jnp.min(stats[:, 0])
        max_r = jnp.max(stats[:, 1])
        min_x = jnp.min(stats[:, 2])
        max_x = jnp.max(stats[:, 3])
        sse = jnp.sum(stats[:, 4])
        kl_sum = stats[0, 5, 0, 0]

        mse_loss = sse / jnp.float32(total)
        kl_div = -0.5 * kl_sum

        # Hoist the normalization divide out of the per-element path.
        scale_r = 2.0 / (max_r - min_r + 1e-8)
        bias_r = -(min_r * scale_r + 1.0)
        scale_x = 2.0 / (max_x - min_x + 1e-8)
        bias_x = -(min_x * scale_x + 1.0)
        sb = jnp.stack([scale_r, bias_r, scale_x, bias_x]).astype(jnp.float32)

        rn2, xn2 = _normalize(sb, r2, x2)
        rn_flat = rn2.reshape(-1)
        xn_flat = xn2.reshape(-1)
        if pad:
            rn_flat = rn_flat[:total]
            xn_flat = xn_flat[:total]
        rn = rn_flat.reshape(B, C, H, W)
        xn = xn_flat.reshape(B, C, H, W)

        # 3x channel repeat stays lazy (broadcast); it is never materialized by
        # the Pallas kernels and XLA fuses it into the LPIPS consumer.
        if C == 1:
            recon_repeated = jnp.broadcast_to(rn, (B, 3, H, W))
            x_repeated = jnp.broadcast_to(xn, (B, 3, H, W))
        else:
            recon_repeated = jnp.concatenate([rn, rn, rn], axis=1)
            x_repeated = jnp.concatenate([xn, xn, xn], axis=1)

        lpips_loss = lpips(recon_repeated, x_repeated)

        return kl_div + (lpips_loss * 4 + mse_loss * 0.003) * self._loss_weight


# TODO(synk): the real `lpips` argument is a pretrained perceptual network
# (VGG/AlexNet) supplied by the caller; a deterministic MSE surrogate is used
# here — the kernel-side prep (normalize + lazy 3-channel repeat) matches the
# PyTorch module exactly.
def lpips_surrogate(a, b):
    return jnp.mean((a - b) ** 2)


# ---------------------------------------------------------------------------
# Demo / self-check
# ---------------------------------------------------------------------------

if __name__ == "__main__":
    def check(shape, key):
        B, C, H, W = shape
        Z = 32
        k1, k2, k3, k4 = jax.random.split(key, 4)
        x = jax.random.normal(k1, shape, dtype=jnp.float32)
        recon = jax.random.normal(k2, shape, dtype=jnp.float32)
        mu = 0.1 * jax.random.normal(k3, (B, Z), dtype=jnp.float32)
        logvar = 0.1 * jax.random.normal(k4, (B, Z), dtype=jnp.float32)

        loss_mod = LAIVAELoss(data_length=100, batch_size=B)
        loss = jax.block_until_ready(
            loss_mod(recon, x, mu, logvar, lpips_surrogate))

        # pure-JAX reference (same math as the PyTorch forward)
        def _norm_ref(t):
            t = jnp.where(jnp.isnan(t), 0.0, t)
            return 2 * (t - t.min()) / (t.max() - t.min() + 1e-8) - 1

        mse_ref = jnp.mean((recon - x) ** 2)
        lp_ref = lpips_surrogate(jnp.tile(_norm_ref(recon), (1, 3, 1, 1)),
                                 jnp.tile(_norm_ref(x), (1, 3, 1, 1)))
        kl_ref = -0.5 * jnp.sum(1.0 + logvar - mu ** 2 - jnp.exp(logvar))
        ref = kl_ref + (lp_ref * 4 + mse_ref * 0.003) * loss_mod.get_loss_weight()
        assert jnp.allclose(loss, ref, rtol=1e-4, atol=1e-4), (
            shape, float(loss), float(ref))

    root = jax.random.PRNGKey(0)
    ks = jax.random.split(root, 4)

    check((2, 1, 16, 16), ks[0])   # single block; phantom-partition path
    check((2, 1, 32, 32), ks[1])   # clean two-partition unmasked path
    check((2, 1, 13, 10), ks[2])   # lane padding + element-masked tail path

    # Exercise the multi-step accumulation / phantom / padded-tail paths while
    # keeping shapes small: temporarily shrink the tile caps (test-only).
    _saved = (_STATS_TILE_CAP, _NORM_TILE_CAP)
    _STATS_TILE_CAP, _NORM_TILE_CAP = 8, 8
    check((2, 1, 48, 48), ks[3])
    _STATS_TILE_CAP, _NORM_TILE_CAP = _saved

    print("KERNEL_OK")
</pallas_src>

<mosaic_0001>
module attributes {stable_mosaic.version = 11 : i64} {
  func.func @kernel(%arg0: i32, %arg1: i32, %arg2: memref<8x128xf32, #tpu.memory_space<vmem>>, %arg3: memref<8x128xf32, #tpu.memory_space<vmem>>, %arg4: memref<2x32xf32, #tpu.memory_space<vmem>>, %arg5: memref<2x32xf32, #tpu.memory_space<vmem>>, %arg6: memref<1x6x8x128xf32, #tpu.memory_space<vmem>>) attributes {dimension_semantics = [#tpu.dimension_semantics<parallel>, #tpu.dimension_semantics<arbitrary>], iteration_bounds = array<i64: 2, 1>, scalar_prefetch = 0 : i64, scratch_operands = 0 : i64, tpu.core_type = #tpu.core_type<tc>, window_params = [{transform_indices = @transform_0, window_bounds = array<i64: 8, 128>}, {transform_indices = @transform_1, window_bounds = array<i64: 8, 128>}, {pipeline_mode = #tpu.pipeline_mode<synchronous>, transform_indices = @transform_2, window_bounds = array<i64: 2, 32>}, {pipeline_mode = #tpu.pipeline_mode<synchronous>, transform_indices = @transform_3, window_bounds = array<i64: 2, 32>}, {transform_indices = @transform_4, window_bounds = array<i64: 1, 6, 8, 128>}]} {
    %c1_i32 = arith.constant 1 : i32
    %0 = arith.muli %arg0, %c1_i32 : i32
    %1 = arith.addi %0, %arg1 : i32
    %c0_i32 = arith.constant 0 : i32
    %2 = arith.cmpi eq, %arg1, %c0_i32 : i32
    %3 = arith.extui %2 : i1 to i32
    %c0_i32_0 = arith.constant 0 : i32
    %4 = arith.cmpi ne, %3, %c0_i32_0 : i32
    scf.if %4 {
      %cst_12 = arith.constant 0x7F800000 : f32
      %26 = vector.broadcast %cst_12 : f32 to vector<8x128xf32>
      %c0_13 = arith.constant 0 : index
      %c0_14 = arith.constant 0 : index
      %c0_15 = arith.constant 0 : index
      %c0_16 = arith.constant 0 : index
      %27 = vector.load %arg6[%c0_13, %c0_14, %c0_15, %c0_16] : memref<1x6x8x128xf32, #tpu.memory_space<vmem>>, vector<1x1x8x128xf32>
      %28 = vector.shape_cast %27 : vector<1x1x8x128xf32> to vector<8x128xf32>
      %29 = vector.shape_cast %26 : vector<8x128xf32> to vector<1x1x8x128xf32>
      tpu.vector_store %arg6[%c0_13, %c0_14, %c0_15, %c0_16], %29 {strides = array<i32>} : memref<1x6x8x128xf32, #tpu.memory_space<vmem>>, vector<1x1x8x128xf32>,
      %cst_17 = arith.constant 0xFF800000 : f32
      %30 = vector.broadcast %cst_17 : f32 to vector<8x128xf32>
      %c0_18 = arith.constant 0 : index
      %c1 = arith.constant 1 : index
      %c0_19 = arith.constant 0 : index
      %c0_20 = arith.constant 0 : index
      %31 = vector.load %arg6[%c0_18, %c1, %c0_19, %c0_20] : memref<1x6x8x128xf32, #tpu.memory_space<vmem>>, vector<1x1x8x128xf32>
      %32 = vector.shape_cast %31 : vector<1x1x8x128xf32> to vector<8x128xf32>
      %33 = vector.shape_cast %30 : vector<8x128xf32> to vector<1x1x8x128xf32>
      tpu.vector_store %arg6[%c0_18, %c1, %c0_19, %c0_20], %33 {strides = array<i32>} : memref<1x6x8x128xf32, #tpu.memory_space<vmem>>, vector<1x1x8x128xf32>,
      %cst_21 = arith.constant 0x7F800000 : f32
      %34 = vector.broadcast %cst_21 : f32 to vector<8x128xf32>
      %c0_22 = arith.constant 0 : index
      %c2 = arith.constant 2 : index
      %c0_23 = arith.constant 0 : index
      %c0_24 = arith.constant 0 : index
      %35 = vector.load %arg6[%c0_22, %c2, %c0_23, %c0_24] : memref<1x6x8x128xf32, #tpu.memory_space<vmem>>, vector<1x1x8x128xf32>
      %36 = vector.shape_cast %35 : vector<1x1x8x128xf32> to vector<8x128xf32>
      %37 = vector.shape_cast %34 : vector<8x128xf32> to vector<1x1x8x128xf32>
      tpu.vector_store %arg6[%c0_22, %c2, %c0_23, %c0_24], %37 {strides = array<i32>} : memref<1x6x8x128xf32, #tpu.memory_space<vmem>>, vector<1x1x8x128xf32>,
      %cst_25 = arith.constant 0xFF800000 : f32
      %38 = vector.broadcast %cst_25 : f32 to vector<8x128xf32>
      %c0_26 = arith.constant 0 : index
      %c3 = arith.constant 3 : index
      %c0_27 = arith.constant 0 : index
      %c0_28 = arith.constant 0 : index
      %39 = vector.load %arg6[%c0_26, %c3, %c0_27, %c0_28] : memref<1x6x8x128xf32, #tpu.memory_space<vmem>>, vector<1x1x8x128xf32>
      %40 = vector.shape_cast %39 : vector<1x1x8x128xf32> to vector<8x128xf32>
      %41 = vector.shape_cast %38 : vector<8x128xf32> to vector<1x1x8x128xf32>
      tpu.vector_store %arg6[%c0_26, %c3, %c0_27, %c0_28], %41 {strides = array<i32>} : memref<1x6x8x128xf32, #tpu.memory_space<vmem>>, vector<1x1x8x128xf32>,
      %cst_29 = arith.constant 0.000000e+00 : f32
      %42 = vector.broadcast %cst_29 : f32 to vector<8x128xf32>
      %c0_30 = arith.constant 0 : index
      %c4 = arith.constant 4 : index
      %c0_31 = arith.constant 0 : index
      %c0_32 = arith.constant 0 : index
      %43 = vector.load %arg6[%c0_30, %c4, %c0_31, %c0_32] : memref<1x6x8x128xf32, #tpu.memory_space<vmem>>, vector<1x1x8x128xf32>
      %44 = vector.shape_cast %43 : vector<1x1x8x128xf32> to vector<8x128xf32>
      %45 = vector.shape_cast %42 : vector<8x128xf32> to vector<1x1x8x128xf32>
      tpu.vector_store %arg6[%c0_30, %c4, %c0_31, %c0_32], %45 {strides = array<i32>} : memref<1x6x8x128xf32, #tpu.memory_space<vmem>>, vector<1x1x8x128xf32>,
      %cst_33 = arith.constant 0.000000e+00 : f32
      %46 = vector.broadcast %cst_33 : f32 to vector<8x128xf32>
      %c0_34 = arith.constant 0 : index
      %c5 = arith.constant 5 : index
      %c0_35 = arith.constant 0 : index
      %c0_36 = arith.constant 0 : index
      %47 = vector.load %arg6[%c0_34, %c5, %c0_35, %c0_36] : memref<1x6x8x128xf32, #tpu.memory_space<vmem>>, vector<1x1x8x128xf32>
      %48 = vector.shape_cast %47 : vector<1x1x8x128xf32> to vector<8x128xf32>
      %49 = vector.shape_cast %46 : vector<8x128xf32> to vector<1x1x8x128xf32>
      tpu.vector_store %arg6[%c0_34, %c5, %c0_35, %c0_36], %49 {strides = array<i32>} : memref<1x6x8x128xf32, #tpu.memory_space<vmem>>, vector<1x1x8x128xf32>,
    } else {
    }
    %c0 = arith.constant 0 : index
    %c0_1 = arith.constant 0 : index
    %5 = vector.load %arg2[%c0, %c0_1] : memref<8x128xf32, #tpu.memory_space<vmem>>, vector<8x128xf32>
    %c0_2 = arith.constant 0 : index
    %c0_3 = arith.constant 0 : index
    %6 = vector.load %arg3[%c0_2, %c0_3] : memref<8x128xf32, #tpu.memory_space<vmem>>, vector<8x128xf32>
    %7 = arith.cmpf one, %5, %5 : vector<8x128xf32>
    %cst = arith.constant 0.000000e+00 : f32
    %8 = vector.broadcast %cst : f32 to vector<8x128xf32>
    %9 = arith.select %7, %8, %5 : vector<8x128xi1>, vector<8x128xf32>
    %10 = arith.cmpf one, %6, %6 : vector<8x128xf32>
    %cst_4 = arith.constant 0.000000e+00 : f32
    %11 = vector.broadcast %cst_4 : f32 to vector<8x128xf32>
    %12 = arith.select %10, %11, %6 : vector<8x128xi1>, vector<8x128xf32>
    %13 = arith.subf %5, %6 : vector<8x128xf32>
    %14 = arith.mulf %13, %13 : vector<8x128xf32>
    %c0_i32_5 = arith.constant 0 : i32
    %15 = arith.cmpi slt, %1, %c0_i32_5 : i32
    %16 = arith.extui %15 : i1 to i32
    %c0_i32_6 = arith.constant 0 : i32
    %17 = arith.cmpi ne, %16, %c0_i32_6 : i32
    scf.if %17 {
      %26 = vector.shape_cast %9 : vector<8x128xf32> to vector<1x8x128xf32>
      %27 = vector.shape_cast %9 : vector<8x128xf32> to vector<1x8x128xf32>
      %28 = vector.shape_cast %12 : vector<8x128xf32> to vector<1x8x128xf32>
      %29 = vector.shape_cast %12 : vector<8x128xf32> to vector<1x8x128xf32>
      %30 = vector.shape_cast %14 : vector<8x128xf32> to vector<1x8x128xf32>
      %c0_12 = arith.constant 0 : index
      %c0_13 = arith.constant 0 : index
      %c0_14 = arith.constant 0 : index
      %c0_15 = arith.constant 0 : index
      %31 = vector.load %arg6[%c0_12, %c0_13, %c0_14, %c0_15] : memref<1x6x8x128xf32, #tpu.memory_space<vmem>>, vector<1x1x8x128xf32>
      %32 = vector.shape_cast %31 : vector<1x1x8x128xf32> to vector<8x128xf32>
      %cst_16 = arith.constant dense<0x7F800000> : vector<8x128xf32>
      %33 = vector.multi_reduction <minimumf>, %26, %cst_16 [0] : vector<1x8x128xf32> to vector<8x128xf32>
      %34 = arith.minimumf %32, %33 : vector<8x128xf32>
      %c0_17 = arith.constant 0 : index
      %c0_18 = arith.constant 0 : index
      %c0_19 = arith.constant 0 : index
      %c0_20 = arith.constant 0 : index
      %35 = vector.load %arg6[%c0_17, %c0_18, %c0_19, %c0_20] : memref<1x6x8x128xf32, #tpu.memory_space<vmem>>, vector<1x1x8x128xf32>
      %36 = vector.shape_cast %35 : vector<1x1x8x128xf32> to vector<8x128xf32>
      %37 = vector.shape_cast %34 : vector<8x128xf32> to vector<1x1x8x128xf32>
      tpu.vector_store %arg6[%c0_17, %c0_18, %c0_19, %c0_20], %37 {strides = array<i32>} : memref<1x6x8x128xf32, #tpu.memory_space<vmem>>, vector<1x1x8x128xf32>,
      %c0_21 = arith.constant 0 : index
      %c1 = arith.constant 1 : index
      %c0_22 = arith.constant 0 : index
      %c0_23 = arith.constant 0 : index
      %38 = vector.load %arg6[%c0_21, %c1, %c0_22, %c0_23] : memref<1x6x8x128xf32, #tpu.memory_space<vmem>>, vector<1x1x8x128xf32>
      %39 = vector.shape_cast %38 : vector<1x1x8x128xf32> to vector<8x128xf32>
      %cst_24 = arith.constant dense<0xFF800000> : vector<8x128xf32>
      %40 = vector.multi_reduction <maximumf>, %27, %cst_24 [0] : vector<1x8x128xf32> to vector<8x128xf32>
      %41 = arith.maximumf %39, %40 : vector<8x128xf32>
      %c0_25 = arith.constant 0 : index
      %c1_26 = arith.constant 1 : index
      %c0_27 = arith.constant 0 : index
      %c0_28 = arith.constant 0 : index
      %42 = vector.load %arg6[%c0_25, %c1_26, %c0_27, %c0_28] : memref<1x6x8x128xf32, #tpu.memory_space<vmem>>, vector<1x1x8x128xf32>
      %43 = vector.shape_cast %42 : vector<1x1x8x128xf32> to vector<8x128xf32>
      %44 = vector.shape_cast %41 : vector<8x128xf32> to vector<1x1x8x128xf32>
      tpu.vector_store %arg6[%c0_25, %c1_26, %c0_27, %c0_28], %44 {strides = array<i32>} : memref<1x6x8x128xf32, #tpu.memory_space<vmem>>, vector<1x1x8x128xf32>,
      %c0_29 = arith.constant 0 : index
      %c2 = arith.constant 2 : index
      %c0_30 = arith.constant 0 : index
      %c0_31 = arith.constant 0 : index
      %45 = vector.load %arg6[%c0_29, %c2, %c0_30, %c0_31] : memref<1x6x8x128xf32, #tpu.memory_space<vmem>>, vector<1x1x8x128xf32>
      %46 = vector.shape_cast %45 : vector<1x1x8x128xf32> to vector<8x128xf32>
      %cst_32 = arith.constant dense<0x7F800000> : vector<8x128xf32>
      %47 = vector.multi_reduction <minimumf>, %28, %cst_32 [0] : vector<1x8x128xf32> to vector<8x128xf32>
      %48 = arith.minimumf %46, %47 : vector<8x128xf32>
      %c0_33 = arith.constant 0 : index
      %c2_34 = arith.constant 2 : index
      %c0_35 = arith.constant 0 : index
      %c0_36 = arith.constant 0 : index
      %49 = vector.load %arg6[%c0_33, %c2_34, %c0_35, %c0_36] : memref<1x6x8x128xf32, #tpu.memory_space<vmem>>, vector<1x1x8x128xf32>
      %50 = vector.shape_cast %49 : vector<1x1x8x128xf32> to vector<8x128xf32>
      %51 = vector.shape_cast %48 : vector<8x128xf32> to vector<1x1x8x128xf32>
      tpu.vector_store %arg6[%c0_33, %c2_34, %c0_35, %c0_36], %51 {strides = array<i32>} : memref<1x6x8x128xf32, #tpu.memory_space<vmem>>, vector<1x1x8x128xf32>,
      %c0_37 = arith.constant 0 : index
      %c3 = arith.constant 3 : index
      %c0_38 = arith.constant 0 : index
      %c0_39 = arith.constant 0 : index
      %52 = vector.load %arg6[%c0_37, %c3, %c0_38, %c0_39] : memref<1x6x8x128xf32, #tpu.memory_space<vmem>>, vector<1x1x8x128xf32>
      %53 = vector.shape_cast %52 : vector<1x1x8x128xf32> to vector<8x128xf32>
      %cst_40 = arith.constant dense<0xFF800000> : vector<8x128xf32>
      %54 = vector.multi_reduction <maximumf>, %29, %cst_40 [0] : vector<1x8x128xf32> to vector<8x128xf32>
      %55 = arith.maximumf %53, %54 : vector<8x128xf32>
      %c0_41 = arith.constant 0 : index
      %c3_42 = arith.constant 3 : index
      %c0_43 = arith.constant 0 : index
      %c0_44 = arith.constant 0 : index
      %56 = vector.load %arg6[%c0_41, %c3_42, %c0_43, %c0_44] : memref<1x6x8x128xf32, #tpu.memory_space<vmem>>, vector<1x1x8x128xf32>
      %57 = vector.shape_cast %56 : vector<1x1x8x128xf32> to vector<8x128xf32>
      %58 = vector.shape_cast %55 : vector<8x128xf32> to vector<1x1x8x128xf32>
      tpu.vector_store %arg6[%c0_41, %c3_42, %c0_43, %c0_44], %58 {strides = array<i32>} : memref<1x6x8x128xf32, #tpu.memory_space<vmem>>, vector<1x1x8x128xf32>,
      %c0_45 = arith.constant 0 : index
      %c4 = arith.constant 4 : index
      %c0_46 = arith.constant 0 : index
      %c0_47 = arith.constant 0 : index
      %59 = vector.load %arg6[%c0_45, %c4, %c0_46, %c0_47] : memref<1x6x8x128xf32, #tpu.memory_space<vmem>>, vector<1x1x8x128xf32>
      %60 = vector.shape_cast %59 : vector<1x1x8x128xf32> to vector<8x128xf32>
      %cst_48 = arith.constant dense<0.000000e+00> : vector<8x128xf32>
      %61 = vector.multi_reduction <add>, %30, %cst_48 [0] : vector<1x8x128xf32> to vector<8x128xf32>
      %62 = arith.addf %60, %61 : vector<8x128xf32>
      %c0_49 = arith.constant 0 : index
      %c4_50 = arith.constant 4 : index
      %c0_51 = arith.constant 0 : index
      %c0_52 = arith.constant 0 : index
      %63 = vector.load %arg6[%c0_49, %c4_50, %c0_51, %c0_52] : memref<1x6x8x128xf32, #tpu.memory_space<vmem>>, vector<1x1x8x128xf32>
      %64 = vector.shape_cast %63 : vector<1x1x8x128xf32> to vector<8x128xf32>
      %65 = vector.shape_cast %62 : vector<8x128xf32> to vector<1x1x8x128xf32>
      tpu.vector_store %arg6[%c0_49, %c4_50, %c0_51, %c0_52], %65 {strides = array<i32>} : memref<1x6x8x128xf32, #tpu.memory_space<vmem>>, vector<1x1x8x128xf32>,
    } else {
    }
    %c0_i32_7 = arith.constant 0 : i32
    %18 = arith.cmpi sge, %1, %c0_i32_7 : i32
    %19 = arith.extui %18 : i1 to i32
    %c0_i32_8 = arith.constant 0 : i32
    %20 = arith.cmpi ne, %19, %c0_i32_8 : i32
    scf.if %20 {
      %26 = tpu.iota {dimensions = array<i32: 0>} : vector<8x128xi32>
      %27 = tpu.iota {dimensions = array<i32: 1>} : vector<8x128xi32>
      %c1024_i32 = arith.constant 1024 : i32
      %28 = arith.muli %1, %c1024_i32 : i32
      %c128_i32 = arith.constant 128 : i32
      %29 = vector.broadcast %c128_i32 : i32 to vector<8x128xi32>
      %30 = arith.muli %26, %29 : vector<8x128xi32>
      %31 = vector.broadcast %28 : i32 to vector<8x128xi32>
      %32 = arith.addi %31, %30 : vector<8x128xi32>
      %33 = arith.addi %32, %27 : vector<8x128xi32>
      %c512_i32 = arith.constant 512 : i32
      %34 = vector.broadcast %c512_i32 : i32 to vector<8x128xi32>
      %35 = arith.cmpi slt, %33, %34 : vector<8x128xi32>
      %cst_12 = arith.constant 0x7F800000 : f32
      %36 = vector.broadcast %cst_12 : f32 to vector<8x128xf32>
      %37 = arith.select %35, %9, %36 : vector<8x128xi1>, vector<8x128xf32>
      %cst_13 = arith.constant 0xFF800000 : f32
      %38 = vector.broadcast %cst_13 : f32 to vector<8x128xf32>
      %39 = arith.select %35, %9, %38 : vector<8x128xi1>, vector<8x128xf32>
      %cst_14 = arith.constant 0x7F800000 : f32
      %40 = vector.broadcast %cst_14 : f32 to vector<8x128xf32>
      %41 = arith.select %35, %12, %40 : vector<8x128xi1>, vector<8x128xf32>
      %cst_15 = arith.constant 0xFF800000 : f32
      %42 = vector.broadcast %cst_15 : f32 to vector<8x128xf32>
      %43 = arith.select %35, %12, %42 : vector<8x128xi1>, vector<8x128xf32>
      %cst_16 = arith.constant 0.000000e+00 : f32
      %44 = vector.broadcast %cst_16 : f32 to vector<8x128xf32>
      %45 = arith.select %35, %14, %44 : vector<8x128xi1>, vector<8x128xf32>
      %46 = vector.shape_cast %37 : vector<8x128xf32> to vector<1x8x128xf32>
      %47 = vector.shape_cast %39 : vector<8x128xf32> to vector<1x8x128xf32>
      %48 = vector.shape_cast %41 : vector<8x128xf32> to vector<1x8x128xf32>
      %49 = vector.shape_cast %43 : vector<8x128xf32> to vector<1x8x128xf32>
      %50 = vector.shape_cast %45 : vector<8x128xf32> to vector<1x8x128xf32>
      %c0_17 = arith.constant 0 : index
      %c0_18 = arith.constant 0 : index
      %c0_19 = arith.constant 0 : index
      %c0_20 = arith.constant 0 : index
      %51 = vector.load %arg6[%c0_17, %c0_18, %c0_19, %c0_20] : memref<1x6x8x128xf32, #tpu.memory_space<vmem>>, vector<1x1x8x128xf32>
      %52 = vector.shape_cast %51 : vector<1x1x8x128xf32> to vector<8x128xf32>
      %cst_21 = arith.constant dense<0x7F800000> : vector<8x128xf32>
      %53 = vector.multi_reduction <minimumf>, %46, %cst_21 [0] : vector<1x8x128xf32> to vector<8x128xf32>
      %54 = arith.minimumf %52, %53 : vector<8x128xf32>
      %c0_22 = arith.constant 0 : index
      %c0_23 = arith.constant 0 : index
      %c0_24 = arith.constant 0 : index
      %c0_25 = arith.constant 0 : index
      %55 = vector.load %arg6[%c0_22, %c0_23, %c0_24, %c0_25] : memref<1x6x8x128xf32, #tpu.memory_space<vmem>>, vector<1x1x8x128xf32>
      %56 = vector.shape_cast %55 : vector<1x1x8x128xf32> to vector<8x128xf32>
      %57 = vector.shape_cast %54 : vector<8x128xf32> to vector<1x1x8x128xf32>
      tpu.vector_store %arg6[%c0_22, %c0_23, %c0_24, %c0_25], %57 {strides = array<i32>} : memref<1x6x8x128xf32, #tpu.memory_space<vmem>>, vector<1x1x8x128xf32>,
      %c0_26 = arith.constant 0 : index
      %c1 = arith.constant 1 : index
      %c0_27 = arith.constant 0 : index
      %c0_28 = arith.constant 0 : index
      %58 = vector.load %arg6[%c0_26, %c1, %c0_27, %c0_28] : memref<1x6x8x128xf32, #tpu.memory_space<vmem>>, vector<1x1x8x128xf32>
      %59 = vector.shape_cast %58 : vector<1x1x8x128xf32> to vector<8x128xf32>
      %cst_29 = arith.constant dense<0xFF800000> : vector<8x128xf32>
      %60 = vector.multi_reduction <maximumf>, %47, %cst_29 [0] : vector<1x8x128xf32> to vector<8x128xf32>
      %61 = arith.maximumf %59, %60 : vector<8x128xf32>
      %c0_30 = arith.constant 0 : index
      %c1_31 = arith.constant 1 : index
      %c0_32 = arith.constant 0 : index
      %c0_33 = arith.constant 0 : index
      %62 = vector.load %arg6[%c0_30, %c1_31, %c0_32, %c0_33] : memref<1x6x8x128xf32, #tpu.memory_space<vmem>>, vector<1x1x8x128xf32>
      %63 = vector.shape_cast %62 : vector<1x1x8x128xf32> to vector<8x128xf32>
      %64 = vector.shape_cast %61 : vector<8x128xf32> to vector<1x1x8x128xf32>
      tpu.vector_store %arg6[%c0_30, %c1_31, %c0_32, %c0_33], %64 {strides = array<i32>} : memref<1x6x8x128xf32, #tpu.memory_space<vmem>>, vector<1x1x8x128xf32>,
      %c0_34 = arith.constant 0 : index
      %c2 = arith.constant 2 : index
      %c0_35 = arith.constant 0 : index
      %c0_36 = arith.constant 0 : index
      %65 = vector.load %arg6[%c0_34, %c2, %c0_35, %c0_36] : memref<1x6x8x128xf32, #tpu.memory_space<vmem>>, vector<1x1x8x128xf32>
      %66 = vector.shape_cast %65 : vector<1x1x8x128xf32> to vector<8x128xf32>
      %cst_37 = arith.constant dense<0x7F800000> : vector<8x128xf32>
      %67 = vector.multi_reduction <minimumf>, %48, %cst_37 [0] : vector<1x8x128xf32> to vector<8x128xf32>
      %68 = arith.minimumf %66, %67 : vector<8x128xf32>
      %c0_38 = arith.constant 0 : index
      %c2_39 = arith.constant 2 : index
      %c0_40 = arith.constant 0 : index
      %c0_41 = arith.constant 0 : index
      %69 = vector.load %arg6[%c0_38, %c2_39, %c0_40, %c0_41] : memref<1x6x8x128xf32, #tpu.memory_space<vmem>>, vector<1x1x8x128xf32>
      %70 = vector.shape_cast %69 : vector<1x1x8x128xf32> to vector<8x128xf32>
      %71 = vector.shape_cast %68 : vector<8x128xf32> to vector<1x1x8x128xf32>
      tpu.vector_store %arg6[%c0_38, %c2_39, %c0_40, %c0_41], %71 {strides = array<i32>} : memref<1x6x8x128xf32, #tpu.memory_space<vmem>>, vector<1x1x8x128xf32>,
      %c0_42 = arith.constant 0 : index
      %c3 = arith.constant 3 : index
      %c0_43 = arith.constant 0 : index
      %c0_44 = arith.constant 0 : index
      %72 = vector.load %arg6[%c0_42, %c3, %c0_43, %c0_44] : memref<1x6x8x128xf32, #tpu.memory_space<vmem>>, vector<1x1x8x128xf32>
      %73 = vector.shape_cast %72 : vector<1x1x8x128xf32> to vector<8x128xf32>
      %cst_45 = arith.constant dense<0xFF800000> : vector<8x128xf32>
      %74 = vector.multi_reduction <maximumf>, %49, %cst_45 [0] : vector<1x8x128xf32> to vector<8x128xf32>
      %75 = arith.maximumf %73, %74 : vector<8x128xf32>
      %c0_46 = arith.constant 0 : index
      %c3_47 = arith.constant 3 : index
      %c0_48 = arith.constant 0 : index
      %c0_49 = arith.constant 0 : index
      %76 = vector.load %arg6[%c0_46, %c3_47, %c0_48, %c0_49] : memref<1x6x8x128xf32, #tpu.memory_space<vmem>>, vector<1x1x8x128xf32>
      %77 = vector.shape_cast %76 : vector<1x1x8x128xf32> to vector<8x128xf32>
      %78 = vector.shape_cast %75 : vector<8x128xf32> to vector<1x1x8x128xf32>
      tpu.vector_store %arg6[%c0_46, %c3_47, %c0_48, %c0_49], %78 {strides = array<i32>} : memref<1x6x8x128xf32, #tpu.memory_space<vmem>>, vector<1x1x8x128xf32>,
      %c0_50 = arith.constant 0 : index
      %c4 = arith.constant 4 : index
      %c0_51 = arith.constant 0 : index
      %c0_52 = arith.constant 0 : index
      %79 = vector.load %arg6[%c0_50, %c4, %c0_51, %c0_52] : memref<1x6x8x128xf32, #tpu.memory_space<vmem>>, vector<1x1x8x128xf32>
      %80 = vector.shape_cast %79 : vector<1x1x8x128xf32> to vector<8x128xf32>
      %cst_53 = arith.constant dense<0.000000e+00> : vector<8x128xf32>
      %81 = vector.multi_reduction <add>, %50, %cst_53 [0] : vector<1x8x128xf32> to vector<8x128xf32>
      %82 = arith.addf %80, %81 : vector<8x128xf32>
      %c0_54 = arith.constant 0 : index
      %c4_55 = arith.constant 4 : index
      %c0_56 = arith.constant 0 : index
      %c0_57 = arith.constant 0 : index
      %83 = vector.load %arg6[%c0_54, %c4_55, %c0_56, %c0_57] : memref<1x6x8x128xf32, #tpu.memory_space<vmem>>, vector<1x1x8x128xf32>
      %84 = vector.shape_cast %83 : vector<1x1x8x128xf32> to vector<8x128xf32>
      %85 = vector.shape_cast %82 : vector<8x128xf32> to vector<1x1x8x128xf32>
      tpu.vector_store %arg6[%c0_54, %c4_55, %c0_56, %c0_57], %85 {strides = array<i32>} : memref<1x6x8x128xf32, #tpu.memory_space<vmem>>, vector<1x1x8x128xf32>,
    } else {
    }
    %c0_i32_9 = arith.constant 0 : i32
    %21 = arith.cmpi eq, %arg1, %c0_i32_9 : i32
    %c0_i32_10 = arith.constant 0 : i32
    %22 = arith.cmpi eq, %arg0, %c0_i32_10 : i32
    %23 = arith.andi %21, %22 : i1
    %24 = arith.extui %23 : i1 to i32
    %c0_i32_11 = arith.constant 0 : i32
    %25 = arith.cmpi ne, %24, %c0_i32_11 : i32
    scf.if %25 {
      %c0_12 = arith.constant 0 : index
      %c0_13 = arith.constant 0 : index
      %26 = vector.load %arg4[%c0_12, %c0_13] : memref<2x32xf32, #tpu.memory_space<vmem>>, vector<2x32xf32>
      %c0_14 = arith.constant 0 : index
      %c0_15 = arith.constant 0 : index
      %27 = vector.load %arg5[%c0_14, %c0_15] : memref<2x32xf32, #tpu.memory_space<vmem>>, vector<2x32xf32>
      %cst_16 = arith.constant 1.000000e+00 : f32
      %28 = vector.broadcast %cst_16 : f32 to vector<2x32xf32>
      %29 = arith.addf %28, %27 : vector<2x32xf32>
      %30 = arith.mulf %26, %26 : vector<2x32xf32>
      %31 = arith.subf %29, %30 : vector<2x32xf32>
      %32 = math.exp %27 : vector<2x32xf32>
      %33 = arith.subf %31, %32 : vector<2x32xf32>
      %34 = vector.shape_cast %33 : vector<2x32xf32> to vector<1x2x32xf32>
      %cst_17 = arith.constant dense<0.000000e+00> : vector<1xf32>
      %35 = vector.multi_reduction <add>, %34, %cst_17 [1, 2] : vector<1x2x32xf32> to vector<1xf32>
      %36 = vector.shape_cast %35 : vector<1xf32> to vector<1x1x1xf32>
      %37 = vector.extract %36[0, 0, 0] : f32 from vector<1x1x1xf32>
      %38 = vector.broadcast %37 : f32 to vector<8x128xf32>
      %c0_18 = arith.constant 0 : index
      %c5 = arith.constant 5 : index
      %c0_19 = arith.constant 0 : index
      %c0_20 = arith.constant 0 : index
      %39 = vector.load %arg6[%c0_18, %c5, %c0_19, %c0_20] : memref<1x6x8x128xf32, #tpu.memory_space<vmem>>, vector<1x1x8x128xf32>
      %40 = vector.shape_cast %39 : vector<1x1x8x128xf32> to vector<8x128xf32>
      %41 = vector.shape_cast %38 : vector<8x128xf32> to vector<1x1x8x128xf32>
      tpu.vector_store %arg6[%c0_18, %c5, %c0_19, %c0_20], %41 {strides = array<i32>} : memref<1x6x8x128xf32, #tpu.memory_space<vmem>>, vector<1x1x8x128xf32>,
    } else {
    }
    return
  }
  func.func @transform_0(%arg0: i32, %arg1: i32) -> (i32, i32) {
    %c1_i32 = arith.constant 1 : i32
    %0 = arith.muli %arg0, %c1_i32 : i32
    %1 = arith.addi %0, %arg1 : i32
    %c0_i32 = arith.constant 0 : i32
    %2 = arith.minsi %1, %c0_i32 : i32
    %c0_i32_0 = arith.constant 0 : i32
    %c0_i32_1 = arith.constant 0 : i32
    return %2, %c0_i32_0 : i32, i32
  }
  func.func @transform_1(%arg0: i32, %arg1: i32) -> (i32, i32) {
    %c1_i32 = arith.constant 1 : i32
    %0 = arith.muli %arg0, %c1_i32 : i32
    %1 = arith.addi %0, %arg1 : i32
    %c0_i32 = arith.constant 0 : i32
    %2 = arith.minsi %1, %c0_i32 : i32
    %c0_i32_0 = arith.constant 0 : i32
    %c0_i32_1 = arith.constant 0 : i32
    return %2, %c0_i32_0 : i32, i32
  }
  func.func @transform_2(%arg0: i32, %arg1: i32) -> (i32, i32) {
    %c0_i32 = arith.constant 0 : i32
    %c0_i32_0 = arith.constant 0 : i32
    %c0_i32_1 = arith.constant 0 : i32
    return %c0_i32, %c0_i32_0 : i32, i32
  }
  func.func @transform_3(%arg0: i32, %arg1: i32) -> (i32, i32) {
    %c0_i32 = arith.constant 0 : i32
    %c0_i32_0 = arith.constant 0 : i32
    %c0_i32_1 = arith.constant 0 : i32
    return %c0_i32, %c0_i32_0 : i32, i32
  }
  func.func @transform_4(%arg0: i32, %arg1: i32) -> (i32, i32, i32, i32) {
    %c0_i32 = arith.constant 0 : i32
    %c0_i32_0 = arith.constant 0 : i32
    %c0_i32_1 = arith.constant 0 : i32
    %c0_i32_2 = arith.constant 0 : i32
    return %arg0, %c0_i32, %c0_i32_0, %c0_i32_1 : i32, i32, i32, i32
  }
}

</mosaic_0001>

<bundles_post_ra>
// kernel: tpu_custom_call.1
= control target key start
LH: loop header
LB: loop body
LE: loop exit
PB: predicated region body
PF: predicated region fallthrough
CT: control target
= control target key end

     0   :  { %9 = vsyncpa [#allocation3], 0  ;;  %s1111_s0 = inlined_call_operand.hbm [shape: f32[8,128], index: 0, kind: input, shape index: {}]   ;;  %s1112_s1 = inlined_call_operand.hbm [shape: f32[8,128], index: 1, kind: input, shape index: {}]   ;;  %s1113_s2 = inlined_call_operand.vmem [shape: f32[2,32], index: 2, kind: input, shape index: {}]   ;;  %s1114_s3 = inlined_call_operand.vmem [shape: f32[2,32], index: 3, kind: input, shape index: {}]   ;;  %s1115_s4 = inlined_call_operand.hbm [shape: f32[2,6,8,128], index: 4, kind: output, shape index: {}]  }
   0x1   :  { %11 = vsyncpa [#allocation3 + $0x1], 0 }
   0x2   :  { %12 = vsyncpa [#allocation6], 0 }
   0x3   :  { %14 = vsyncpa [#allocation6 + $0x1], 0 }
   0x4   :  { %15 = vsyncpa [#allocation4], 0 }
   0x5   :  { %17 = vsyncpa [#allocation4 + $0x1], 0  ;;  %s863_s15 = smov 0   ;;  %s865_s16 = smov 0  }
   0x6   :  { %s867_s17 = smov 0   ;;  %s869_s18 = smov 0  }
   0x7   :  { %s871_s19 = smov 0   ;;  %s873_s20 = smov 0  }
   0x8   :  { %s875_s21 = smov 0   ;;  %s877_s22 = smov 0  }
   0x9 LB: > { %s518_s23 = sadd.s32 4294967295, %s828_s22   ;;  %s519_s24 = sadd.s32 4294967294, %s828_s22   ;;  %s828_s22 = sphi %s877_s22, %s23_s22   ;;  %s824_s21 = sphi %s875_s21, %s1136_s21   ;;  %s820_s20 = sphi %s873_s20, %s1135_s20   ;;  %s816_s19 = sphi %s871_s19, %s1101_s19   ;;  %s812_s18 = sphi %s869_s18, %s1134_s18   ;;  %s808_s17 = sphi %s867_s17, %s1133_s17   ;;  %s804_s16 = sphi %s865_s16, %s1132_s16   ;;  %s800_s15 = sphi %s863_s15, %s1131_s15  }
   0xa   : > { %s35_s25 = sadd.s32 1, %s824_s21  ;;  %p797_p1 = scmp.ne.s32.totalorder %s816_s19, 0 }
   0xb   : > { %p37_p0 = scmp.ge.s32.totalorder %s35_s25, 2  ;;  %p56_p2 = scmp.eq.s32.totalorder %s828_s22, 0 }
   0xc   : > { %p61_p3 = scmp.ne.s32.totalorder %s816_s19, %s812_s18  ;;  %p62_p5 = scmp.eq.s32.totalorder %s518_s23, 0 }
   0xd   : > { %s1138_s25 = smov (%p37_p0, %s35_s25), 0  ;;  %p909_p4 = por %p797_p1, %p56_p2 }
   0xe   : > { %p913_p6 = por %p62_p5, %p61_p3  ;;  %s145_s28 = ssub.s32 %s824_s21, %s1138_s25 }
   0xf   : > { %p146_p7 = scmp.eq.s32.totalorder %s145_s28, 0  ;;  %s148_s29 = sadd.s32 1, %s808_s17 }
  0x10   : > { %s1119_s27 = scalar_select %p913_p6, 1, 0 }
  0x11   : > { %s921_s30 = scalar_select %p146_p7, %s808_s17, %s148_s29  }
  0x12   : > { %p158_p8 = scmp.ne.s32.totalorder %s808_s17, %s804_s16  ;;  %p159_p9 = scmp.eq.s32.totalorder %s518_s23, 1 }
  0x13   : > { %p164_p10 = scmp.ne.s32.totalorder %s804_s16, %s800_s15  ;;  %p165_p11 = scmp.eq.s32.totalorder %s519_s24, 1 }
  0x14   : > { %p927_p12 = por %p159_p9, %p158_p8  ;;  %p580_p1 = scmp.lt.s32.totalorder %s828_s22, 2 }
  0x15   : > { %p932_p0 = por %p165_p11, %p164_p10  ;;  %s830_s7 = smov [#allocation2]  }
  0x16   : > { %s1120_s5 = scalar_select %p927_p12, 1, 0 }
  0x17   : > { %s1121_s6 = scalar_select %p932_p0, 1, 0 }
  0x18   : > { %s205_s8 = sshll.u32 %s830_s7, 4  ;;  %p939_p2 = pnand %p580_p1, %p909_p4  ;;  %s206_s8 = int_to_ptr.vmem [resolvable:$true] %s205_s8 }
  0x19   : > { %s661_s12 = scalar_lea.hbm %s1111_s0, 128 }
  0x1a   : > { %p662_p7 = scmp.ne.s32.totalorder %s1111_s0, %s661_s12  ;;  %p663_p8 = pneg %p939_p2 }
  0x1b   : > { %p668_p10 = scmp.lt.u32.totalorder %s661_s12, %s661_s12  ;;  %p670_p11 = scmp.lt.u32.totalorder %s661_s12, %s1111_s0 }
  0x1c   : > { %p664_p4 = pnand %p663_p8, %p662_p7 }
  0x1d   : > { %p671_p1 = por %p670_p11, %p668_p10 }
  0x1e   : > { %p665_p9 = pneg %p664_p4 }
  0x20   : > { %p672_p13 = pnand %p671_p1, %p665_p9 }
  0x22   : > { %675 = shalt.err (!%p672_p13)
}
  0x23   : > { %s676_s24 = scalar_lea.vmem %s206_s8, 128  ;;  %s683_s26 = scalar_lea.vmem %s206_s8, 256 }
  0x24   : > { %p677_p3 = scmp.ne.s32.totalorder %s206_s8, %s676_s24  ;;  %p684_p12 = scmp.lt.s32.totalorder %s206_s8, %s206_s8 }
  0x25   : > { %p685_p6 = scmp.lt.s32.totalorder %s683_s26, %s676_s24 }
  0x26   : > { %p679_p5 = pnand %p677_p3, %p663_p8 }
  0x27   : > { %p686_p7 = por %p685_p6, %p684_p12 }
  0x28   : > { %p680_p0 = pneg %p679_p5 }
  0x2a   : > { %p687_p4 = pnand %p686_p7, %p680_p0 }
  0x2c   : > { %690 = shalt.err (!%p687_p4)
}
  0x2d   : > { %572 = dma.hbm_to_vmem [thread:$0]  (!%p939_p2), %s1111_s0, 128, %s206_s8, [#allocation3]  }
  0x2e   : > { %p1123_p13 = scmp.lt.s32.totalorder %s828_s22, 3  ;;  %p1124_p9 = scmp.ge.s32.totalorder %s828_s22, 1 }
  0x2f   : > { %s831_s10 = smov [#allocation5]   ;;  %s691_s14 = scalar_lea.hbm %s1112_s1, 128 }
  0x30   : > { %p971_p10 = pnand %p1124_p9, %p1123_p13  ;;  %s226_s11 = sshll.u32 %s831_s10, 4  ;;  %s227_s11 = int_to_ptr.vmem [resolvable:$true] %s226_s11 }
  0x31   : > { %p692_p6 = scmp.ne.s32.totalorder %s1112_s1, %s691_s14  ;;  %p698_p3 = scmp.lt.u32.totalorder %s691_s14, %s691_s14 }
  0x32   : > { %s1125_s7 = scalar_select %p971_p10, 1, 0 }
  0x33   : > { %p694_p12 = pnand %p692_p6, %p663_p8  ;;  %p700_p5 = scmp.lt.u32.totalorder %s691_s14, %s1112_s1 }
  0x35   : > { %p695_p0 = pneg %p694_p12  ;;  %p701_p11 = por %p700_p5, %p698_p3 }
  0x37   : > { %p702_p1 = pnand %p701_p11, %p695_p0 }
  0x39   : > { %705 = shalt.err (!%p702_p1)
}
  0x3a   : > { %s706_s26 = scalar_lea.vmem %s227_s11, 128  ;;  %s713_s28 = scalar_lea.vmem %s227_s11, 256 }
  0x3b   : > { %p707_p7 = scmp.ne.s32.totalorder %s227_s11, %s706_s26  ;;  %p714_p9 = scmp.lt.s32.totalorder %s227_s11, %s227_s11 }
  0x3c   : > { %p715_p10 = scmp.lt.s32.totalorder %s713_s28, %s706_s26 }
  0x3d   : > { %p709_p4 = pnand %p707_p7, %p663_p8 }
  0x3e   : > { %p716_p6 = por %p715_p10, %p714_p9 }
  0x3f   : > { %p710_p13 = pneg %p709_p4 }
  0x41   : > { %p717_p12 = pnand %p716_p6, %p710_p13 }
  0x43   : > { %720 = shalt.err (!%p717_p12)
}
  0x44   : > { %575 = dma.hbm_to_vmem [thread:$0]  (!%p939_p2), %s1112_s1, 128, %s227_s11, [#allocation6]  }
  0x45   : > { %p1126_p0 = scmp.ne.s32.totalorder %s1125_s7, 0 }
  0x46   : > { %s237_s12 = sand.u32 (!%p1126_p0), 1, %s816_s19   ;;  %p1127_p8 = scmp.ne.s32.totalorder (!%p1126_p0), %s1119_s27, 0 }
  0x47   : > { %235 = sbr.rel (%p1126_p0) target bundleno = 366 (0x16e), region = 36  ;;  %s527_s13 = sshll.u32 (!%p1126_p0), %s237_s12, 3 }
  0x48   : > { %s238_s14 = scalar_lea.sflag (!%p1126_p0), [#allocation3], %s237_s12  ;;  %s241_s18 = scalar_lea.vmem (!%p1126_p0), [#allocation2], %s527_s13 }
  0x4e   : > { %786 = dma.done.wait (%p1127_p8), %s238_s14, 128  }
  0x4f   : > { %788 = vsyncadd (%p1127_p8), %s238_s14, 4294967168  ;;  %s247_s9 = scalar_lea.sflag [#allocation6], %s237_s12  ;;  %s250_s23 = scalar_lea.vmem [#allocation5], %s527_s13 }
  0x50   : > { %790 = dma.done.wait (%p1127_p8), %s247_s9, 128  }
  0x51   : > { %792 = vsyncadd (%p1127_p8), %s247_s9, 4294967168  ;;  %s277_s7 = sand.u32 1, %s804_s16   ;;  %v832_v0 = vmov inf   ;;  %v833_v1 = vmov -inf   ;;  %v834_v2 = vmov 0.0   ;;  %v302_v3 = vld [vmem:[%s241_s18] sm:$0xff] }
  0x52   : > { %s559_s11 = smul.u32 48, %s277_s7  ;;  %v303_v4 = vld [vmem:[%s250_s23] sm:$0xff]  ;;  %vm304_vm0 = vcmp.ne.f32.partialorder %v302_v3, %v302_v3  ;;  %p534_p2 = scmp.ge.s32.totalorder %s820_s20, 0 }
  0x53   : > { %vm306_vm1 = vcmp.ne.f32.partialorder %v303_v4, %v303_v4  ;;  %v308_v5 = vsub.f32 %v302_v3, %v303_v4  ;;  %v305_v6 = vsel %vm304_vm0, 0.0, %v302_v3 }
  0x54   : > { %s1009_s8 = scalar_lea.vmem [#allocation7], %s559_s11  ;;  %v307_v7 = vsel %vm306_vm1, 0.0, %v303_v4  ;;  %313 = sbr.rel (%p534_p2) target bundleno = 98 (0x62), region = 52 }
  0x55   : > { %291 = vst [vmem:[%s1009_s8] sm:$0xff] %v832_v0  ;;  %530 = vst [vmem:[%s1009_s8 + $0x10] sm:$0xff] %v832_v0  ;;  %v309_v8 = vmul.f32 %v308_v5, %v308_v5 }
  0x56   : > { %529 = vst [vmem:[%s1009_s8 + $0x8] sm:$0xff] %v833_v1  ;;  %531 = vst [vmem:[%s1009_s8 + $0x18] sm:$0xff] %v833_v1 }
  0x57   : > { %532 = vst [vmem:[%s1009_s8 + $0x20] sm:$0xff] %v834_v2  ;;  %533 = vst [vmem:[%s1009_s8 + $0x28] sm:$0xff] %v834_v2 }
  0x5c   : > { %v314_v9 = vld [vmem:[%s1009_s8] sm:$0xff]  ;;  %v537_v11 = vld [vmem:[%s1009_s8 + $0x10] sm:$0xff] }
  0x5d   : > { %v535_v10 = vld [vmem:[%s1009_s8 + $0x8] sm:$0xff]  ;;  %v315_v12 = vmin.f32 %v314_v9, %v305_v6  ;;  %v323_v14 = vmin.f32 %v537_v11, %v307_v7  ;;  %v539_v15 = vld [vmem:[%s1009_s8 + $0x18] sm:$0xff] }
  0x5e   : > { %v319_v13 = vmax.f32 %v535_v10, %v305_v6  ;;  %v541_v16 = vld [vmem:[%s1009_s8 + $0x20] sm:$0xff]  ;;  %v327_v17 = vmax.f32 %v539_v15, %v307_v7 }
  0x5f   : > { %v332_v18 = vadd.f32 %v541_v16, %v309_v8  ;;  %316 = vst [vmem:[%s1009_s8] sm:$0xff] %v315_v12  ;;  %538 = vst [vmem:[%s1009_s8 + $0x10] sm:$0xff] %v323_v14 }
  0x60   : > { %536 = vst [vmem:[%s1009_s8 + $0x8] sm:$0xff] %v319_v13  ;;  %540 = vst [vmem:[%s1009_s8 + $0x18] sm:$0xff] %v327_v17 }
  0x61   : > { %542 = vst [vmem:[%s1009_s8 + $0x20] sm:$0xff] %v332_v18 }
  0x62 PF: > { %p543_p10 = scmp.lt.s32.totalorder %s820_s20, 0 }
  0x63   : > { %v338_v19 = vlaneseq (!%p543_p10)  ;;  %s544_s27 = sshll.u32 (!%p543_p10), %s820_s20, 10 }
  0x64   : > { %337 = sbr.rel (%p543_p10) target bundleno = 116 (0x74), region = 56  ;;  %v344_v21 = vstv (!%p543_p10), %s544_s27 }
  0x65   : > { %v339_v20 = vshrl.u32 (!%p543_p10), %v338_v19, 7  ;;  %v341_v22 = vand.u32 (!%p543_p10), 127, %v338_v19 }
  0x66   : > { %v353_v26 = vld [vmem:[%s1009_s8] sm:$0xff] (!%p543_p10)  ;;  %v547_v28 = vld [vmem:[%s1009_s8 + $0x10] sm:$0xff] (!%p543_p10) }
  0x67   : > { %v343_v23 = vmul.u32 (!%p543_p10), 128, %v339_v20  ;;  %v545_v27 = vld [vmem:[%s1009_s8 + $0x8] sm:$0xff] (!%p543_p10)  ;;  %v549_v29 = vld [vmem:[%s1009_s8 + $0x18] sm:$0xff] (!%p543_p10) }
  0x68   : > { %v551_v34 = vld [vmem:[%s1009_s8 + $0x20] sm:$0xff] (!%p543_p10) }
  0x69   : > { %v345_v24 = vadd.s32 (!%p543_p10), %v344_v21, %v343_v23 }
  0x6b   : > { %v346_v25 = vadd.s32 %v345_v24, %v341_v22 }
  0x6d   : > { %vm347_vm2 = vcmp.lt.s32.totalorder %v346_v25, 512 }
  0x6e   : > { %v348_v30 = vsel %vm347_vm2, %v305_v6, inf  ;;  %v349_v31 = vsel %vm347_vm2, %v305_v6, -inf  ;;  %v350_v32 = vsel %vm347_vm2, %v307_v7, inf  ;;  %v351_v33 = vsel %vm347_vm2, %v307_v7, -inf }
  0x6f   : > { %v354_v35 = vmin.f32 %v353_v26, %v348_v30  ;;  %v358_v36 = vmax.f32 %v545_v27, %v349_v31  ;;  %v362_v37 = vmin.f32 %v547_v28, %v350_v32  ;;  %v366_v38 = vmax.f32 %v549_v29, %v351_v33 }
  0x70   : > { %v352_v39 = vsel %vm347_vm2, %v309_v8, 0.0 }
  0x71   : > { %355 = vst [vmem:[%s1009_s8] sm:$0xff] %v354_v35  ;;  %546 = vst [vmem:[%s1009_s8 + $0x8] sm:$0xff] %v358_v36  ;;  %v371_v40 = vadd.f32 %v551_v34, %v352_v39 }
  0x72   : > { %548 = vst [vmem:[%s1009_s8 + $0x10] sm:$0xff] %v362_v37  ;;  %550 = vst [vmem:[%s1009_s8 + $0x18] sm:$0xff] %v366_v38 }
  0x73   : > { %552 = vst [vmem:[%s1009_s8 + $0x20] sm:$0xff] %v371_v40 }
  0x74 PF: > { %p373_p3 = scmp.eq.s32.totalorder %s820_s20, 0 }
  0x75   : > { %v379_v41 = vld [vmem:[%s1114_s3] sm:$0x3] (%p373_p3)  ;;  %vm386_vm3 = vcmask (%p373_p3), 254976  }
  0x76   : > { %377 = sbr.rel (!%p373_p3) target bundleno = 340 (0x154), region = 60  ;;  %v383_v42 = vmul.f32 (%p373_p3), 1.442695, %v379_v41  ;;  %v378_v43 = vld [vmem:[%s1113_s2] sm:$0x3] (%p373_p3)  ;;  %v380_v44 = vadd.f32 (%p373_p3), 1.0, %v379_v41 }
  0x77   : > { %v381_v45 = vmul.f32 (%p373_p3), %v378_v43, %v378_v43 }
  0x78   : > { %659 = vpow2.f32 (%p373_p3), %v383_v42 }
  0x79   : > { %v382_v46 = vsub.f32 (%p373_p3), %v380_v44, %v381_v45 }
  0x82   : > { %v660_v47 = vpop.eup %659 }
  0x83   : > { %v385_v48 = vsub.f32 %v382_v46, %v660_v47 }
  0x85   : > { %v387_v49 = vsel %vm386_vm3, %v385_v48, 0.0 }
  0x86   : > { %388 = vadd.xlane.f32.xlu0 %v387_v49 }
 0x113   : > { %v389_v50 = vpop.xlane.xlu0 %388 }
 0x114   : > { %v390_v51 = vrot.slane %v389_v50, 4 }
 0x116   : > { %v391_v52 = vadd.f32 %v390_v51, %v389_v50 }
 0x118   : > { %v392_v53 = vrot.slane %v391_v52, 2 }
 0x11a   : > { %v393_v54 = vadd.f32 %v392_v53, %v391_v52 }
 0x11c   : > { %v394_v55 = vrot.slane %v393_v54, 1 }
 0x11e   : > { %v395_v56 = vadd.f32 %v394_v55, %v393_v54 }
 0x120   : > { %560 = vpush %v395_v56 }
 0x151   : > { %s561_s10 = spop %560 }
 0x152   : > { %v397_v57 = vstv %s561_s10 }
 0x153   : > { %554 = vst [vmem:[%s1009_s8 + $0x28] sm:$0xff] %v397_v57 }
 0x154 PF: > { %s562_s12 = smul.u32 768, %s820_s20  ;;  %s414_s13 = sshll.u32 %s1009_s8, 4  ;;  %s1055_s13 = int_to_ptr.vmem [resolvable:$true] %s414_s13 }
 0x155   : > { %s1059_s23 = scalar_lea.sflag [#allocation4], %s277_s7  ;;  %s721_s11 = scalar_lea.vmem %s1055_s13, 768 }
 0x156   : > { %s1053_s9 = scalar_lea.hbm %s1115_s4, %s562_s12  ;;  %p722_p5 = scmp.ne.s32.totalorder %s1055_s13, %s721_s11 }
 0x157   : > { %p1128_p11 = scmp.ne.s32.totalorder %s1120_s5, 0  ;;  %s835_s20 = smov [#allocation7]  }
 0x158   : > { %s725_s8 = sshll.u32 %s835_s20, 4  ;;  %s726_s8 = int_to_ptr.vmem [resolvable:$false] %s725_s8 }
 0x159   : > { %p723_p1 = pnand %p722_p5, %p1128_p11  ;;  %s727_s27 = scalar_lea.vmem %s726_s8, 1536 }
 0x15a   : > { %p728_p4 = scmp.lt.s32.totalorder %s1055_s13, %s726_s8  ;;  %p729_p13 = scmp.lt.s32.totalorder %s727_s27, %s721_s11 }
 0x15b   : > { %p724_p7 = pneg %p723_p1 }
 0x15c   : > { %p730_p9 = por %p729_p13, %p728_p4 }
 0x15e   : > { %p731_p6 = pnand %p730_p9, %p724_p7 }
 0x160   : > { %734 = shalt.err (!%p731_p6)
}
 0x161   : > { %s735_s7 = scalar_lea.hbm %s1053_s9, 768  ;;  %s739_s28 = scalar_lea.hbm %s1115_s4, 1536 }
 0x162   : > { %p736_p12 = scmp.ne.s32.totalorder %s1053_s9, %s735_s7  ;;  %p740_p2 = scmp.lt.u32.totalorder %s1053_s9, %s1115_s4 }
 0x163   : > { %p741_p10 = scmp.lt.u32.totalorder %s739_s28, %s735_s7  ;;  %p743_p5 = scmp.lt.u32.totalorder %s735_s7, %s1053_s9 }
 0x164   : > { %p737_p0 = pnand %p736_p12, %p1128_p11 }
 0x165   : > { %p742_p3 = por %p741_p10, %p740_p2 }
 0x166   : > { %p738_p8 = pneg %p737_p0 }
 0x167   : > { %p744_p1 = por %p743_p5, %p742_p3 }
 0x169   : > { %p745_p7 = pnand %p744_p1, %p738_p8 }
 0x16b   : > { %748 = shalt.err (!%p745_p7)
}
 0x16c   : > { %s836_s12 = smov 128   ;;  %s837_s14 = smov 8  }
 0x16d   : > { %567 = dma.vmem_to_hbm [thread:$0]  (%p1128_p11), %s1055_s13, 768, %s1053_s9, %s1059_s23, %s836_s12, %s836_s12, %s837_s14  }
 0x16e PF: > { %s429_s18 = sand.u32 1, %s800_s15   ;;  %p1129_p4 = scmp.ne.s32.totalorder %s1121_s6, 0 }
 0x16f   : > { %p1130_p13 = scmp.ge.s32.totalorder %s828_s22, 2  ;;  %s430_s11 = scalar_lea.sflag [#allocation4], %s429_s18 }
 0x171   : > { %p577_p9 = pnand %p1130_p13, %p1129_p4 }
 0x173   : > { %794 = dma.done.wait (!%p577_p9), %s430_s11, 768  }
 0x174   : > { %796 = vsyncadd (!%p577_p9), %s430_s11, 4294966528  ;;  %s23_s22 = sadd.s32 1, %s828_s22   ;;  %s1131_s15 = smov %s804_s16 }
 0x175   : > { %p20_p6 = scmp.ge.s32.totalorder %s23_s22, 4   ;;  %s1132_s16 = smov %s808_s17 }
 0x176   : > { %s1133_s17 = smov %s921_s30  ;;  %s1134_s18 = smov %s816_s19 }
 0x177   : > { %s1101_s19 = smov 0   ;;  %s1135_s20 = smov %s824_s21 }
 0x178   : > { %s1136_s21 = smov %s1138_s25  ;;  %22 = sbr.rel (!%p20_p6) target bundleno = 9 (0x9), region = 124 }
 0x17f   :  { %435 = vsyncpa [#allocation3], 1 }
 0x180   :  { %437 = vsyncpa [#allocation3 + $0x1], 1 }
 0x181   :  { %438 = vsyncpa [#allocation6], 1 }
 0x182   :  { %440 = vsyncpa [#allocation6 + $0x1], 1 }
 0x183   :  { %441 = vsyncpa [#allocation4], 1 }
 0x184   :  { %443 = vsyncpa [#allocation4 + $0x1], 1 }

</bundles_post_ra>
